<compile_context>
chip_gen: v7x
topology: tpu7x:2x2x1
jax: 0.10.0
libtpu: 0.0.40
codegen_flags: <defaults>
</compile_context>

<pallas_src>
import functools

import jax
import jax.numpy as jnp
from jax import lax
from jax.experimental import pallas as pl
from jax.experimental.pallas import tpu as pltpu


# ---------------------------------------------------------------------------
# Fused kernel: per batch row, QKV projection + attention + output projection
# ---------------------------------------------------------------------------
def _fused_attn_kernel(x_ref, wqkv_ref, wo_ref, bo_ref, o_ref,
                       qkv_ref, outh_ref, *, heads, dim_head):
    # x_ref    : (1, N, DIM)       bf16  current batch row
    # wqkv_ref : (DIM, 3*inner)    bf16  packed [q | k | v], q cols pre-scaled
    # wo_ref   : (inner, DIM)      bf16  output projection (already W^T)
    # bo_ref   : (1, DIM)          f32   output projection bias
    # o_ref    : (1, N, DIM)       bf16  result
    # qkv_ref  : (N, 3*inner)      bf16  VMEM scratch (staged QKV)
    # outh_ref : (N, inner)        bf16  VMEM scratch (per-head attn outputs)
    inner = heads * dim_head

    x = x_ref[0]                                                # (N, DIM) bf16

    # One wide QKV matmul for all heads (full MXU column occupancy).  Staged to
    # a bf16 scratch ref so the f32 result is not live across the head loop.
    qkv_ref[...] = jnp.dot(
        x, wqkv_ref[...], preferred_element_type=jnp.float32
    ).astype(jnp.bfloat16)                                      # (N, 3*inner)

    for h in range(heads):                      # static, unrolled head loop
        lo = h * dim_head
        q = qkv_ref[:, lo:lo + dim_head]                        # (N, DH) bf16
        k = qkv_ref[:, inner + lo:inner + lo + dim_head]        # (N, DH) bf16
        v = qkv_ref[:, 2 * inner + lo:2 * inner + lo + dim_head]

        # q @ k^T without an explicit transpose of k (contract over DH).
        dots = lax.dot_general(
            q, k,
            dimension_numbers=(((1,), (1,)), ((), ())),
            preferred_element_type=jnp.float32)                 # (N, N) f32

        # Softmax with deferred normalization: matmul the unnormalized probs
        # (<= 1, safe in bf16) with v, then scale the (N, DH) result instead of
        # the (N, N) matrix.  Reciprocal goes to the EUP slot.
        m = jnp.max(dots, axis=-1, keepdims=True)
        p = jnp.exp(dots - m)                                   # (N, N) f32
        l = jnp.sum(p, axis=-1, keepdims=True)                  # (N, 1) f32
        out_h = jnp.dot(p.astype(jnp.bfloat16), v,
                        preferred_element_type=jnp.float32)     # (N, DH) f32
        out_h = out_h * pl.reciprocal(l, approx=True)

        outh_ref[:, lo:lo + dim_head] = out_h.astype(jnp.bfloat16)

    # Single inner-deep output projection (better MXU fill than H separate
    # K=dim_head contractions); bias added in the epilogue.
    y = jnp.dot(outh_ref[...], wo_ref[...],
                preferred_element_type=jnp.float32) + bo_ref[...]
    o_ref[0] = y.astype(o_ref.dtype)


def _vmem_limit_bytes():
    # v5e/v6e: 128 MiB VMEM per core -> allow ~96 MiB; v7x: 64 MiB -> ~48 MiB.
    try:
        cap = pltpu.get_tpu_info().vmem_capacity_bytes
        return int(min(cap * 3 // 4, 96 * 1024 * 1024))
    except Exception:
        return 48 * 1024 * 1024


def fused_attention(x_bf16, w_qkv_packed, w_o_t, b_o, *, heads, dim_head):
    # x_bf16        : (B, N, DIM)        bf16
    # w_qkv_packed  : (DIM, 3*inner)     bf16 (q columns pre-scaled)
    # w_o_t         : (inner, DIM)       bf16
    # b_o           : (1, DIM)           f32
    B, N, DIM = x_bf16.shape
    inner = heads * dim_head

    # NOTE: in real deployments DIM should be a multiple of 128 so the output
    #       store is a lane-dense, unmasked vst (demo DIM=32 is correct but
    #       takes the masked-store path).
    kernel = functools.partial(_fused_attn_kernel,
                               heads=heads, dim_head=dim_head)
    return pl.pallas_call(
        kernel,
        out_shape=jax.ShapeDtypeStruct((B, N, DIM), jnp.bfloat16),
        grid_spec=pltpu.PrefetchScalarGridSpec(
            num_scalar_prefetch=0,
            grid=(B,),
            in_specs=[
                pl.BlockSpec((1, N, DIM), lambda b: (b, 0, 0)),
                pl.BlockSpec((DIM, 3 * inner), lambda b: (0, 0)),
                pl.BlockSpec((inner, DIM), lambda b: (0, 0)),
                pl.BlockSpec((1, DIM), lambda b: (0, 0)),
            ],
            out_specs=pl.BlockSpec((1, N, DIM), lambda b: (b, 0, 0)),
            scratch_shapes=[
                pltpu.VMEM((N, 3 * inner), jnp.bfloat16),   # staged QKV
                pltpu.VMEM((N, inner), jnp.bfloat16),       # per-head outputs
            ],
        ),
        compiler_params=pltpu.CompilerParams(
            dimension_semantics=("parallel",),
            vmem_limit_bytes=_vmem_limit_bytes(),
        ),
    )(x_bf16, w_qkv_packed, w_o_t, b_o)


# ---------------------------------------------------------------------------
# Parameter packing (done ONCE, hoisted out of the per-call path)
# ---------------------------------------------------------------------------
def prepare_params(w_qkv, w_o, b_o, *, heads, dim_head):
    # nn.Linear stores weight as (out, in); y = x @ W^T.  Column order of
    # w_qkv.T is [q heads... | k heads... | v heads...], with head h occupying
    # a contiguous dim_head-wide slice — matching the in-kernel static slices.
    # The 1/sqrt(dim_head) softmax scale is folded into the q columns here
    # (in f32, before the bf16 cast), so the kernel has no per-element scale.
    inner = heads * dim_head
    scale = dim_head ** -0.5
    w = jnp.asarray(w_qkv, jnp.float32).T                       # (DIM, 3*inner)
    w = w.at[:, :inner].multiply(scale)
    w_qkv_packed = w.astype(jnp.bfloat16)
    w_o_t = jnp.asarray(w_o, jnp.float32).T.astype(jnp.bfloat16)  # (inner, DIM)
    b_o2 = jnp.asarray(b_o, jnp.float32).reshape(1, -1)           # (1, DIM)
    return w_qkv_packed, w_o_t, b_o2


def attention_forward(x, w_qkv_packed, w_o_t, b_o, *, heads, dim_head):
    return fused_attention(x.astype(jnp.bfloat16), w_qkv_packed, w_o_t, b_o,
                           heads=heads, dim_head=dim_head)


# ---------------------------------------------------------------------------
# Reference (mirrors the kernel's bf16-operand / f32-accumulate numerics)
# ---------------------------------------------------------------------------
def attention_reference(x, w_qkv, w_o, b_o, *, heads, dim_head):
    B, N, DIM = x.shape
    inner = heads * dim_head
    scale = dim_head ** -0.5

    xb = x.astype(jnp.bfloat16)
    qkv = jnp.dot(xb, w_qkv.T.astype(jnp.bfloat16),
                  preferred_element_type=jnp.float32)            # (B, N, 3*inner)
    q, k, v = jnp.split(qkv, 3, axis=-1)

    def rh(t):
        return t.reshape(B, N, heads, dim_head).transpose(0, 2, 1, 3)

    q, k, v = rh(q), rh(k), rh(v)
    q = q * scale
    dots = jnp.einsum('bhid,bhjd->bhij',
                      q.astype(jnp.bfloat16), k.astype(jnp.bfloat16),
                      preferred_element_type=jnp.float32)
    attn = jax.nn.softmax(dots, axis=-1)
    out = jnp.einsum('bhij,bhjd->bhid',
                     attn.astype(jnp.bfloat16), v.astype(jnp.bfloat16),
                     preferred_element_type=jnp.float32)
    out = out.transpose(0, 2, 1, 3).reshape(B, N, inner)
    y = jnp.dot(out.astype(jnp.bfloat16), w_o.T.astype(jnp.bfloat16),
                preferred_element_type=jnp.float32) + b_o
    return y


if __name__ == "__main__":
    # Small shapes consistent with the module.
    B, N, DIM = 2, 8, 32
    HEADS, DIM_HEAD = 2, 64
    INNER = HEADS * DIM_HEAD

    key = jax.random.PRNGKey(0)
    kx, kqkv, kwo, kbo = jax.random.split(key, 4)

    x = jax.random.normal(kx, (B, N, DIM), dtype=jnp.float32)
    # Deterministic synthetic parameters (shapes match nn.Linear weights).
    w_qkv = jax.random.normal(kqkv, (3 * INNER, DIM), dtype=jnp.float32) * (DIM ** -0.5)
    w_o = jax.random.normal(kwo, (DIM, INNER), dtype=jnp.float32) * (INNER ** -0.5)
    b_o = jax.random.normal(kbo, (DIM,), dtype=jnp.float32) * 0.01

    # Pack / cast parameters once (not per forward call).
    w_qkv_packed, w_o_t, b_o2 = prepare_params(w_qkv, w_o, b_o,
                                               heads=HEADS, dim_head=DIM_HEAD)

    y = attention_forward(x, w_qkv_packed, w_o_t, b_o2,
                          heads=HEADS, dim_head=DIM_HEAD)
    y = jax.block_until_ready(y)

    y_ref = attention_reference(x, w_qkv, w_o, b_o, heads=HEADS, dim_head=DIM_HEAD)
    assert y.shape == (B, N, DIM)
    y32 = y.astype(jnp.float32)
    max_err = jnp.max(jnp.abs(y32 - y_ref))
    assert jnp.allclose(y32, y_ref, atol=2e-2, rtol=2e-2), (
        f"mismatch vs JAX reference (max abs err = {max_err})")

    print("KERNEL_OK")
</pallas_src>

<mosaic_0001>
module attributes {stable_mosaic.version = 11 : i64} {
  func.func @_fused_attn_kernel(%arg0: i32, %arg1: memref<1x8x32xbf16, #tpu.memory_space<vmem>>, %arg2: memref<32x384xbf16, #tpu.memory_space<vmem>>, %arg3: memref<128x32xbf16, #tpu.memory_space<vmem>>, %arg4: memref<1x32xf32, #tpu.memory_space<vmem>>, %arg5: memref<1x8x32xbf16, #tpu.memory_space<vmem>>, %arg6: memref<8x384xbf16, #tpu.memory_space<vmem>>, %arg7: memref<8x128xbf16, #tpu.memory_space<vmem>>) attributes {dimension_semantics = [#tpu.dimension_semantics<parallel>], iteration_bounds = array<i64: 2>, scalar_prefetch = 0 : i64, scratch_operands = 2 : i64, tpu.core_type = #tpu.core_type<tc>, window_params = [{transform_indices = @transform_0, window_bounds = array<i64: 1, 8, 32>}, {pipeline_mode = #tpu.pipeline_mode<synchronous>, transform_indices = @transform_1, window_bounds = array<i64: 32, 384>}, {pipeline_mode = #tpu.pipeline_mode<synchronous>, transform_indices = @transform_2, window_bounds = array<i64: 128, 32>}, {pipeline_mode = #tpu.pipeline_mode<synchronous>, transform_indices = @transform_3, window_bounds = array<i64: 1, 32>}, {transform_indices = @transform_4, window_bounds = array<i64: 1, 8, 32>}]} {
    %c0 = arith.constant 0 : index
    %c0_0 = arith.constant 0 : index
    %c0_1 = arith.constant 0 : index
    %0 = vector.load %arg1[%c0, %c0_0, %c0_1] : memref<1x8x32xbf16, #tpu.memory_space<vmem>>, vector<1x8x32xbf16>
    %1 = vector.shape_cast %0 : vector<1x8x32xbf16> to vector<8x32xbf16>
    %c0_2 = arith.constant 0 : index
    %c0_3 = arith.constant 0 : index
    %2 = vector.load %arg2[%c0_2, %c0_3] : memref<32x384xbf16, #tpu.memory_space<vmem>>, vector<32x384xbf16>
    %cst = arith.constant dense<0.000000e+00> : vector<8x384xf32>
    %3 = tpu.matmul %1, %2, %cst {dimension_numbers = #tpu.dot_dimension_numbers<[1], [0], [0], [1], [0, 0, 1, 1], [], []>} : vector<8x32xbf16>, vector<32x384xbf16>, vector<8x384xf32> -> vector<8x384xf32>
    %4 = arith.truncf %3 : vector<8x384xf32> to vector<8x384xbf16>
    %c0_4 = arith.constant 0 : index
    %c0_5 = arith.constant 0 : index
    %5 = vector.load %arg6[%c0_4, %c0_5] : memref<8x384xbf16, #tpu.memory_space<vmem>>, vector<8x384xbf16>
    tpu.vector_store %arg6[%c0_4, %c0_5], %4 {strides = array<i32>} : memref<8x384xbf16, #tpu.memory_space<vmem>>, vector<8x384xbf16>,
    %c0_6 = arith.constant 0 : index
    %c0_7 = arith.constant 0 : index
    %6 = vector.load %arg6[%c0_6, %c0_7] : memref<8x384xbf16, #tpu.memory_space<vmem>>, vector<8x64xbf16>
    %c0_8 = arith.constant 0 : index
    %c128 = arith.constant 128 : index
    %7 = vector.load %arg6[%c0_8, %c128] : memref<8x384xbf16, #tpu.memory_space<vmem>>, vector<8x64xbf16>
    %c0_9 = arith.constant 0 : index
    %c256 = arith.constant 256 : index
    %8 = vector.load %arg6[%c0_9, %c256] : memref<8x384xbf16, #tpu.memory_space<vmem>>, vector<8x64xbf16>
    %cst_10 = arith.constant dense<0.000000e+00> : vector<8x8xf32>
    %9 = tpu.matmul %6, %7, %cst_10 {dimension_numbers = #tpu.dot_dimension_numbers<[1], [1], [0], [0], [0, 0, 1, 0], [], []>} : vector<8x64xbf16>, vector<8x64xbf16>, vector<8x8xf32> -> vector<8x8xf32>
    %cst_11 = arith.constant dense<0xFF800000> : vector<8xf32>
    %10 = vector.multi_reduction <maximumf>, %9, %cst_11 [1] : vector<8x8xf32> to vector<8xf32>
    %11 = vector.shape_cast %10 : vector<8xf32> to vector<8x1xf32>
    %12 = vector.broadcast %11 : vector<8x1xf32> to vector<8x8xf32>
    %13 = arith.subf %9, %12 : vector<8x8xf32>
    %14 = math.exp %13 : vector<8x8xf32>
    %cst_12 = arith.constant dense<0.000000e+00> : vector<8xf32>
    %15 = vector.multi_reduction <add>, %14, %cst_12 [1] : vector<8x8xf32> to vector<8xf32>
    %16 = vector.shape_cast %15 : vector<8xf32> to vector<8x1xf32>
    %17 = arith.truncf %14 : vector<8x8xf32> to vector<8x8xbf16>
    %cst_13 = arith.constant dense<0.000000e+00> : vector<8x64xf32>
    %18 = tpu.matmul %17, %8, %cst_13 {dimension_numbers = #tpu.dot_dimension_numbers<[1], [0], [0], [1], [0, 0, 1, 1], [], []>} : vector<8x8xbf16>, vector<8x64xbf16>, vector<8x64xf32> -> vector<8x64xf32>
    %19 = tpu.reciprocal %16 {approx = true} : vector<8x1xf32> -> vector<8x1xf32>
    %20 = vector.broadcast %19 : vector<8x1xf32> to vector<8x64xf32>
    %21 = arith.mulf %18, %20 : vector<8x64xf32>
    %22 = arith.truncf %21 : vector<8x64xf32> to vector<8x64xbf16>
    %c0_14 = arith.constant 0 : index
    %c0_15 = arith.constant 0 : index
    %23 = vector.load %arg7[%c0_14, %c0_15] : memref<8x128xbf16, #tpu.memory_space<vmem>>, vector<8x64xbf16>
    tpu.vector_store %arg7[%c0_14, %c0_15], %22 {strides = array<i32>} : memref<8x128xbf16, #tpu.memory_space<vmem>>, vector<8x64xbf16>,
    %c0_16 = arith.constant 0 : index
    %c64 = arith.constant 64 : index
    %24 = vector.load %arg6[%c0_16, %c64] : memref<8x384xbf16, #tpu.memory_space<vmem>>, vector<8x64xbf16>
    %c0_17 = arith.constant 0 : index
    %c192 = arith.constant 192 : index
    %25 = vector.load %arg6[%c0_17, %c192] : memref<8x384xbf16, #tpu.memory_space<vmem>>, vector<8x64xbf16>
    %c0_18 = arith.constant 0 : index
    %c320 = arith.constant 320 : index
    %26 = vector.load %arg6[%c0_18, %c320] : memref<8x384xbf16, #tpu.memory_space<vmem>>, vector<8x64xbf16>
    %cst_19 = arith.constant dense<0.000000e+00> : vector<8x8xf32>
    %27 = tpu.matmul %24, %25, %cst_19 {dimension_numbers = #tpu.dot_dimension_numbers<[1], [1], [0], [0], [0, 0, 1, 0], [], []>} : vector<8x64xbf16>, vector<8x64xbf16>, vector<8x8xf32> -> vector<8x8xf32>
    %cst_20 = arith.constant dense<0xFF800000> : vector<8xf32>
    %28 = vector.multi_reduction <maximumf>, %27, %cst_20 [1] : vector<8x8xf32> to vector<8xf32>
    %29 = vector.shape_cast %28 : vector<8xf32> to vector<8x1xf32>
    %30 = vector.broadcast %29 : vector<8x1xf32> to vector<8x8xf32>
    %31 = arith.subf %27, %30 : vector<8x8xf32>
    %32 = math.exp %31 : vector<8x8xf32>
    %cst_21 = arith.constant dense<0.000000e+00> : vector<8xf32>
    %33 = vector.multi_reduction <add>, %32, %cst_21 [1] : vector<8x8xf32> to vector<8xf32>
    %34 = vector.shape_cast %33 : vector<8xf32> to vector<8x1xf32>
    %35 = arith.truncf %32 : vector<8x8xf32> to vector<8x8xbf16>
    %cst_22 = arith.constant dense<0.000000e+00> : vector<8x64xf32>
    %36 = tpu.matmul %35, %26, %cst_22 {dimension_numbers = #tpu.dot_dimension_numbers<[1], [0], [0], [1], [0, 0, 1, 1], [], []>} : vector<8x8xbf16>, vector<8x64xbf16>, vector<8x64xf32> -> vector<8x64xf32>
    %37 = tpu.reciprocal %34 {approx = true} : vector<8x1xf32> -> vector<8x1xf32>
    %38 = vector.broadcast %37 : vector<8x1xf32> to vector<8x64xf32>
    %39 = arith.mulf %36, %38 : vector<8x64xf32>
    %40 = arith.truncf %39 : vector<8x64xf32> to vector<8x64xbf16>
    %c0_23 = arith.constant 0 : index
    %c64_24 = arith.constant 64 : index
    %41 = vector.load %arg7[%c0_23, %c64_24] : memref<8x128xbf16, #tpu.memory_space<vmem>>, vector<8x64xbf16>
    tpu.vector_store %arg7[%c0_23, %c64_24], %40 {strides = array<i32>} : memref<8x128xbf16, #tpu.memory_space<vmem>>, vector<8x64xbf16>,
    %c0_25 = arith.constant 0 : index
    %c0_26 = arith.constant 0 : index
    %42 = vector.load %arg7[%c0_25, %c0_26] : memref<8x128xbf16, #tpu.memory_space<vmem>>, vector<8x128xbf16>
    %c0_27 = arith.constant 0 : index
    %c0_28 = arith.constant 0 : index
    %43 = vector.load %arg3[%c0_27, %c0_28] : memref<128x32xbf16, #tpu.memory_space<vmem>>, vector<128x32xbf16>
    %cst_29 = arith.constant dense<0.000000e+00> : vector<8x32xf32>
    %44 = tpu.matmul %42, %43, %cst_29 {dimension_numbers = #tpu.dot_dimension_numbers<[1], [0], [0], [1], [0, 0, 1, 1], [], []>} : vector<8x128xbf16>, vector<128x32xbf16>, vector<8x32xf32> -> vector<8x32xf32>
    %c0_30 = arith.constant 0 : index
    %c0_31 = arith.constant 0 : index
    %45 = vector.load %arg4[%c0_30, %c0_31] : memref<1x32xf32, #tpu.memory_space<vmem>>, vector<1x32xf32>
    %46 = vector.broadcast %45 : vector<1x32xf32> to vector<8x32xf32>
    %47 = arith.addf %44, %46 : vector<8x32xf32>
    %48 = arith.truncf %47 : vector<8x32xf32> to vector<8x32xbf16>
    %c0_32 = arith.constant 0 : index
    %c0_33 = arith.constant 0 : index
    %c0_34 = arith.constant 0 : index
    %49 = vector.load %arg5[%c0_32, %c0_33, %c0_34] : memref<1x8x32xbf16, #tpu.memory_space<vmem>>, vector<1x8x32xbf16>
    %50 = vector.shape_cast %49 : vector<1x8x32xbf16> to vector<8x32xbf16>
    %51 = vector.shape_cast %48 : vector<8x32xbf16> to vector<1x8x32xbf16>
    tpu.vector_store %arg5[%c0_32, %c0_33, %c0_34], %51 {strides = array<i32>} : memref<1x8x32xbf16, #tpu.memory_space<vmem>>, vector<1x8x32xbf16>,
    return
  }
  func.func @transform_0(%arg0: i32) -> (i32, i32, i32) {
    %c0_i32 = arith.constant 0 : i32
    %c0_i32_0 = arith.constant 0 : i32
    %c0_i32_1 = arith.constant 0 : i32
    return %arg0, %c0_i32, %c0_i32_0 : i32, i32, i32
  }
  func.func @transform_1(%arg0: i32) -> (i32, i32) {
    %c0_i32 = arith.constant 0 : i32
    %c0_i32_0 = arith.constant 0 : i32
    %c0_i32_1 = arith.constant 0 : i32
    return %c0_i32, %c0_i32_0 : i32, i32
  }
  func.func @transform_2(%arg0: i32) -> (i32, i32) {
    %c0_i32 = arith.constant 0 : i32
    %c0_i32_0 = arith.constant 0 : i32
    %c0_i32_1 = arith.constant 0 : i32
    return %c0_i32, %c0_i32_0 : i32, i32
  }
  func.func @transform_3(%arg0: i32) -> (i32, i32) {
    %c0_i32 = arith.constant 0 : i32
    %c0_i32_0 = arith.constant 0 : i32
    %c0_i32_1 = arith.constant 0 : i32
    return %c0_i32, %c0_i32_0 : i32, i32
  }
  func.func @transform_4(%arg0: i32) -> (i32, i32, i32) {
    %c0_i32 = arith.constant 0 : i32
    %c0_i32_0 = arith.constant 0 : i32
    %c0_i32_1 = arith.constant 0 : i32
    return %arg0, %c0_i32, %c0_i32_0 : i32, i32, i32
  }
}

</mosaic_0001>

<bundles_post_ra>
// kernel: tpu_custom_call.1
= control target key start
LH: loop header
LB: loop body
LE: loop exit
PB: predicated region body
PF: predicated region fallthrough
CT: control target
= control target key end

     0   :  { %9 = vsyncpa [#allocation5], 0  ;;  %s1230_s0 = inlined_call_operand.vmem [shape: bf16[2,8,32], index: 0, kind: input, shape index: {}]   ;;  %s1231_s1 = inlined_call_operand.vmem [shape: bf16[32,384], index: 1, kind: input, shape index: {}]   ;;  %s1232_s2 = inlined_call_operand.vmem [shape: bf16[128,32], index: 2, kind: input, shape index: {}]   ;;  %s1233_s3 = inlined_call_operand.vmem [shape: f32[1,32], index: 3, kind: input, shape index: {}]   ;;  %s1234_s4 = inlined_call_operand.hbm [shape: bf16[2,8,32], index: 4, kind: output, shape index: {}]  }
   0x1   :  { %11 = vsyncpa [#allocation5 + $0x1], 0  ;;  %s1043_s15 = smov 0   ;;  %s1045_s16 = smov 0  }
   0x2   :  { %s1047_s17 = smov 0   ;;  %s1049_s18 = smov 0  }
   0x3 LB: > { %s1064_s19 = sadd.s32 4294967295, %s1011_s18   ;;  %s767_s20 = sadd.s32 4294967294, %s1011_s18   ;;  %s1011_s18 = sphi %s1049_s18, %s1240_s18   ;;  %s1007_s17 = sphi %s1047_s17, %s1239_s17   ;;  %s1003_s16 = sphi %s1045_s16, %s1238_s16   ;;  %s999_s15 = sphi %s1043_s15, %s1237_s15  }
   0x4   : > { %s1068_s21 = sadd.s32 1, %s1011_s18   ;;  %s113_s22 = sadd.s32 1, %s1007_s17 }
   0x5   : > { %s110_s23 = ssub.s32 %s1011_s18, %s1068_s21  ;;  %p123_p0 = scmp.ne.s32.totalorder %s1007_s17, %s1003_s16 }
   0x6   : > { %p111_p1 = scmp.eq.s32.totalorder %s110_s23, 0  ;;  %p124_p2 = scmp.eq.s32.totalorder %s1064_s19, 1 }
   0x7   : > { %p129_p3 = scmp.ne.s32.totalorder %s1003_s16, %s999_s15  ;;  %p130_p4 = scmp.eq.s32.totalorder %s767_s20, 1 }
   0x8   : > { %s1079_s24 = scalar_select %p111_p1, %s1007_s17, %s113_s22  }
   0x9   : > { %p1081_p5 = por %p124_p2, %p123_p0  ;;  %p1085_p6 = por %p130_p4, %p129_p3 }
   0xa   : > { %p770_p7 = scmp.ge.s32.totalorder %s1011_s18, 1  ;;  %p164_p8 = scmp.lt.s32.totalorder %s1011_s18, 3 }
   0xc   : > { %p165_p9 = pnand %p770_p7, %p164_p8 }
   0xd   : > { %v922_v0 = vld [vmem:[%s1231_s1 + $0x4] ss:$12 sps:$4 sm:$0xff] (!%p165_p9)   ;;  %p189_p10 = scmp.lt.s32.totalorder (!%p165_p9), %s1064_s19, 1  ;;  %v924_v1 = vld [vmem:[%s1231_s1] ss:$12 sps:$4 sm:$0xff] (!%p165_p9)   ;;  %v1013_v2 = vmov (!%p165_p9), 0  }
   0xe   : > { %168 = sbr.rel (%p165_p9) target bundleno = 1314 (0x522), region = 36  ;;  %271 = vmatprep.mubr.bf16.mxu1 (!%p165_p9), %v1013_v2  ;;  %239 = vmatprep.subr.bf16.mxu1 (!%p165_p9), %v922_v0  ;;  %v925_v3 = vld [vmem:[%s1231_s1 + $0x1c] ss:$12 sps:$4 sm:$0xff] (!%p165_p9)   ;;  %v927_v4 = vld [vmem:[%s1231_s1 + $0x18] ss:$12 sps:$4 sm:$0xff] (!%p165_p9)   ;;  %v1014_v5 = vmov (!%p165_p9), 0.0  }
   0xf   : > { %847 = vmatprep.subr.bf16.mxu0 (!%p165_p9), %v1014_v5  ;;  %240 = vmatpush1.bf16.msra.mxu1 (!%p165_p9), %v924_v1  ;;  %vm235_vm0 = vcmask (!%p165_p9), 261120   ;;  %v928_v7 = vld [vmem:[%s1231_s1 + $0x8] ss:$12 sps:$4 sm:$0xff] (!%p165_p9)   ;;  %v929_v8 = vld [vmem:[%s1231_s1 + $0x20] ss:$12 sps:$4 sm:$0xff] (!%p165_p9)   ;;  %vm1015_vm1 = vmmov (!%p165_p9), 0  }
  0x10   : > { %241 = vmatprep.subr.bf16.mxu1 (!%p165_p9), %v925_v3  ;;  %849 = vmatprep.mubr.msk.bf16.mxu0 (!%p165_p9), %vm1015_vm1, %v1014_v5  ;;  %vm338_vm2 = vcmask (!%p165_p9), 523264   ;;  %s1016_s27 = smov (!%p165_p9), 64   ;;  %vm399_vm3 = vcmask (!%p165_p9), 1043456   ;;  %vm385_vm4 = vcmask (!%p165_p9), 64512   ;;  %v933_v55 = vld [vmem:[%s1232_s2] sm:$0xff] (!%p165_p9)   ;;  %v934_v56 = vld [vmem:[%s1232_s2 + $0x8] sm:$0xff] (!%p165_p9)  }
  0x11   : > { %v935_v57 = vld [vmem:[%s1232_s2 + $0x10] sm:$0xff] (!%p165_p9)   ;;  %vm446_vm5 = vcmask (!%p165_p9), 519168   ;;  %v936_v1 = vld [vmem:[%s1232_s2 + $0x18] sm:$0xff] (!%p165_p9)   ;;  %v937_v2 = vld [vmem:[%s1232_s2 + $0x20] sm:$0xff] (!%p165_p9)   ;;  %vm577_vm6 = vcmask (!%p165_p9), 1043968   ;;  %s186_s28 = sand.u32 (!%p165_p9), 1, %s1003_s16  }
  0x12   : > { %v938_v3 = vld [vmem:[%s1232_s2 + $0x28] sm:$0xff] (!%p165_p9)   ;;  %s771_s29 = sshll.u32 (!%p165_p9), %s186_s28, 2  ;;  %s801_s6 = sshll.u32 (!%p165_p9), %s1064_s19, 6  ;;  %vm692_vm7 = vcmask (!%p165_p9), 257024  }
  0x13   : > { %242 = vmatpush1.bf16.msra.mxu1 (!%p165_p9), %v927_v4  ;;  %s188_s7 = scalar_lea.vmem (!%p165_p9), [#allocation4], %s771_s29  ;;  %s1017_s12 = smov (!%p165_p9), [#allocation4]  }
  0x14   : > { %827 = vmatprep.subr.bf16.mxu1 (!%p165_p9), %v1014_v5  ;;  %s708_s8 = sshll.u32 (!%p165_p9), %s188_s7, 4  ;;  %s1190_s8 = int_to_ptr.vmem [resolvable:$true] %s708_s8 }
  0x15   : > { %s190_s9 = scalar_select %p189_p10, %s1064_s19, 1 }
  0x16   : > { %s695_s19 = scalar_lea.sflag [#allocation5], %s186_s28  ;;  %s949_s11 = scalar_lea.vmem %s1190_s8, 64 }
  0x17   : > { %s772_s10 = sshll.u32 %s190_s9, 2  ;;  %p950_p11 = scmp.ne.s32.totalorder %s1190_s8, %s949_s11 }
  0x18   : > { %s192_s13 = scalar_lea.vmem %s1230_s0, %s772_s10  ;;  %s1188_s10 = scalar_lea.hbm %s1234_s4, %s801_s6 }
  0x19   : > { %v194_v6 = vld [vmem:[%s192_s13] sm:$0xf]  ;;  %p951_p12 = pnand %p950_p11, %p1081_p5  ;;  %s953_s13 = sshll.u32 %s1017_s12, 4  ;;  %s954_s13 = int_to_ptr.vmem [resolvable:$false] %s953_s13 }
  0x1a   : > { %779 = vmatmul.mubr.msk.bf16.vlgmr.msra.gmra.mrb[0].mxu1 %vm235_vm0, %v194_v6  ;;  %s955_s14 = scalar_lea.vmem %s954_s13, 128  ;;  %p956_p0 = scmp.lt.s32.totalorder %s1190_s8, %s954_s13 }
  0x1b   : > { %828 = vmatpush3.bf16.msra.mxu1 %v928_v7  ;;  %831 = vmatprep.mubr.msk.bf16.mxu1 %vm1015_vm1, %v1014_v5  ;;  %v940_v7 = vld [vmem:[%s1232_s2 + $0x38] sm:$0xff]   ;;  %p952_p13 = pneg %p951_p12  ;;  %p957_p1 = scmp.lt.s32.totalorder %s955_s14, %s949_s11 }
  0x1c   : > { %829 = vmatprep.subr.bf16.mxu1 %v1014_v5 }
  0x1d   : > { %p958_p2 = por %p957_p1, %p956_p0 }
  0x1f   : > { %830 = vmatpush3.bf16.msra.mxu1 %v929_v8  ;;  %p959_p3 = pnand %p958_p2, %p952_p13 }
  0x20   : > { %835 = vmatprep.subr.bf16.mxu1 %v1014_v5 }
  0x22   : > { %832 = vmatmul.mubr.msk.bf16.vlgmr.msra.gmra.mrb[4].mxu1 %vm235_vm0, %v194_v6  ;;  %v939_v6 = vld [vmem:[%s1232_s2 + $0x30] sm:$0xff]  }
  0x23   : > { %837 = vmatprep.mubr.msk.bf16.mxu1 %vm1015_vm1, %v1014_v5 }
  0xed   : > { %v273_v9 = vpop.f32.mrb[0].mxu1 }
  0xee   : > { %v275_v10 = vpop.f32.mrb[1].mxu1 }
  0xef   : > { %v804_v11 = vpack.c.bf16 %v275_v10, %v273_v9  ;;  %v277_v12 = vpop.f32.mrb[2].mxu1 }
  0xf0   : > { %v278_v13 = vpop.f32.mrb[3].mxu1 }
  0xf1   : > { %333 = vst [vmem:[#allocation2] sm:$0xff] %v804_v11 }
  0xf5   : > { %v314_v19 = vpop.f32.mrb[4].mxu1 }
  0xf6   : > { %v805_v20 = vpack.c.bf16 %v314_v19, %v314_v19  ;;  %v833_v21 = vpop.f32.mrb[5].mxu1 }
  0xf7   : > { %v317_v22 = vpop.f32.mrb[6].mxu1 }
  0xf8   : > { %v336_v14 = vld [vmem:[#allocation2 + $0x4] sm:$0xf]  ;;  %v931_v17 = vld [vmem:[#allocation2] ss:$0 sps:$4 sm:$0xff]   ;;  %334 = vst [vmem:[#allocation2 + $0x8] sm:$0xf] %v805_v20 }
  0xf9   : > { %v930_v15 = vld [vmem:[#allocation2 + $0x4] ss:$0 sps:$4 sm:$0xff]   ;;  %v343_v16 = vsel %vm338_vm2, %v336_v14, 0  ;;  %v335_v18 = vld [vmem:[#allocation2] sm:$0xf]  ;;  %v834_v23 = vpop.f32.mrb[7].mxu1 }
  0xfa   : > { %836 = vmatpush3.bf16.xpose.msra.mxu1 %v343_v16  ;;  %459 = vrot.lane.b32.xlu0 %v930_v15, %s1016_s27 }
  0xfb   : > { %841 = vmatprep.subr.bf16.mxu1 %v1014_v5 }
  0xfe   : > { %454 = vrot.lane.b32.xlu0 %v931_v17, %s1016_s27 }
  0xff   : > { %v337_v24 = vld [vmem:[#allocation2 + $0x8] sm:$0xf] }
 0x100   : > { %v932_v25 = vld [vmem:[#allocation2 + $0x8] ss:$0 sps:$4 sm:$0xff]   ;;  %v401_v26 = vsel %vm399_vm3, %v337_v24, 0 }
 0x101   : > { %838 = vmatmul.mubr.msk.bf16.vlgmr.msra.gmra.mrb[8].mxu1 %vm338_vm2, %v335_v18 }
 0x102   : > { %843 = vmatprep.mubr.msk.bf16.mxu1 %vm1015_vm1, %v1014_v5  ;;  %842 = vmatpush3.bf16.msra.mxu1 %v401_v26 }
 0x103   : > { %520 = vrot.lane.b32.xlu0 %v932_v25, %s1016_s27  ;;  %853 = vmatprep.subr.bf16.mxu1 %v1014_v5 }
 0x16c   : > { %v460_v27 = vpop.permute.xlu0 %459 }
 0x16d   : > { %v465_v28 = vsel %vm338_vm2, %v460_v27, 0 }
 0x16e   : > { %848 = vmatpush3.bf16.xpose.msra.mxu0 %v465_v28 }
 0x16f   : > { %859 = vmatprep.subr.bf16.mxu0 %v1014_v5 }
 0x170   : > { %v455_v29 = vpop.permute.xlu0 %454 }
 0x175   : > { %850 = vmatmul.mubr.msk.bf16.vlgmr.msra.gmra.mrb[0].mxu0 %vm338_vm2, %v455_v29  ;;  %v521_v43 = vpop.permute.xlu0 %520 }
 0x176   : > { %875 = vmatprep.mubr.msk.bf16.mxu0 %vm1015_vm1, %v1014_v5  ;;  %v526_v47 = vsel %vm399_vm3, %v521_v43, 0  ;;  %860 = vmatpush3.bf16.msra.mxu0 %v933_v55 }
 0x177   : > { %861 = vmatprep.subr.bf16.mxu0 %v1014_v5 }
 0x17a   : > { %862 = vmatpush3.bf16.msra.mxu0 %v934_v56 }
 0x17b   : > { %863 = vmatprep.subr.bf16.mxu0 %v1014_v5 }
 0x17e   : > { %864 = vmatpush3.bf16.msra.mxu0 %v935_v57 }
 0x17f   : > { %865 = vmatprep.subr.bf16.mxu0 %v1014_v5 }
 0x182   : > { %866 = vmatpush3.bf16.msra.mxu0 %v936_v1 }
 0x183   : > { %867 = vmatprep.subr.bf16.mxu0 %v1014_v5 }
 0x186   : > { %868 = vmatpush3.bf16.msra.mxu0 %v937_v2 }
 0x187   : > { %869 = vmatprep.subr.bf16.mxu0 %v1014_v5 }
 0x18a   : > { %870 = vmatpush3.bf16.msra.mxu0 %v938_v3 }
 0x18b   : > { %871 = vmatprep.subr.bf16.mxu0 %v1014_v5 }
 0x18e   : > { %872 = vmatpush3.bf16.msra.mxu0 %v939_v6 }
 0x18f   : > { %873 = vmatprep.subr.bf16.mxu0 %v1014_v5 }
 0x192   : > { %874 = vmatpush3.bf16.msra.mxu0 %v940_v7 }
 0x1d4   : > { %v379_v30 = vpop.f32.mrb[8].mxu1 }
 0x1d5   : > { %v839_v31 = vpop.f32.mrb[9].mxu1  ;;  %v386_v32 = vsel %vm385_vm4, %v379_v30, -inf }
 0x1d6   : > { %387 = vmax.xlane.f32.xlu1 %v386_v32  ;;  %v382_v33 = vpop.f32.mrb[10].mxu1 }
 0x1d7   : > { %v840_v34 = vpop.f32.mrb[11].mxu1 }
 0x248   : > { %v501_v35 = vpop.f32.mrb[0].mxu0 }
 0x249   : > { %v851_v36 = vpop.f32.mrb[1].mxu0  ;;  %v507_v37 = vsel %vm385_vm4, %v501_v35, -inf }
 0x24a   : > { %v504_v38 = vpop.f32.mrb[2].mxu0  ;;  %508 = vmax.xlane.f32.xlu1 %v507_v37 }
 0x24b   : > { %v852_v39 = vpop.f32.mrb[3].mxu0 }
 0x263   : > { %v388_v40 = vpop.xlane.xlu1 %387 }
 0x264   : > { %v389_v41 = vsub.f32 %v379_v30, %v388_v40 }
 0x266   : > { %v390_v42 = vmul.f32 1.442695, %v389_v41 }
 0x268   : > { %941 = vpow2.f32 %v390_v42 }
 0x272   : > { %v942_v44 = vpop.eup %941 }
 0x273   : > { %v392_v45 = vsel %vm385_vm4, %v942_v44, 0.0  ;;  %v395_v46 = vpack.c.bf16 %v942_v44, %v942_v44 }
 0x274   : > { %393 = vadd.xlane.f32.xlu0 %v392_v45 }
 0x275   : > { %844 = vmatmul.mubr.msk.bf16.vlgmr.msra.gmra.mrb[12].mxu1 %vm385_vm4, %v395_v46 }
 0x276   : > { %854 = vmatpush3.bf16.msra.mxu1 %v526_v47  ;;  %855 = vmatprep.mubr.msk.bf16.mxu1 %vm1015_vm1, %v1014_v5  ;;  %v791_v5 = vld [vmem:[%s1233_s3] ss:$0 sm:$0xff] }
 0x2d7   : > { %v509_v48 = vpop.xlane.xlu1 %508 }
 0x2d8   : > { %v510_v49 = vsub.f32 %v501_v35, %v509_v48 }
 0x2da   : > { %v511_v50 = vmul.f32 1.442695, %v510_v49 }
 0x2dc   : > { %943 = vpow2.f32 %v511_v50 }
 0x2e6   : > { %v944_v51 = vpop.eup %943 }
 0x2e7   : > { %v513_v52 = vsel %vm385_vm4, %v944_v51, 0.0  ;;  %v516_v53 = vpack.c.bf16 %v944_v51, %v944_v51 }
 0x2e8   : > { %514 = vadd.xlane.f32.xlu1 %v513_v52 }
 0x2e9   : > { %856 = vmatmul.mubr.msk.bf16.vlgmr.msra.gmra.mrb[16].mxu1 %vm385_vm4, %v516_v53 }
 0x301   : > { %v394_v54 = vpop.xlane.xlu0 %393 }
 0x302   : > { %945 = vrcp.f32 %v394_v54 }
 0x30c   : > { %v946_v58 = vpop.eup %945 }
 0x348   : > { %v437_v59 = vpop.f32.mrb[12].mxu1 }
 0x349   : > { %v444_v60 = vmul.f32 %v946_v58, %v437_v59  ;;  %v845_v61 = vpop.f32.mrb[13].mxu1 }
 0x34a   : > { %v440_v62 = vpop.f32.mrb[14].mxu1 }
 0x34b   : > { %v445_v63 = vpack.c.bf16 %v444_v60, %v444_v60  ;;  %v846_v0 = vpop.f32.mrb[15].mxu1 }
 0x34d   : > { %447 = vst.msk [vmem:[#allocation3] sm:$0xf] %vm446_vm5, %v445_v63 }
 0x375   : > { %v515_v4 = vpop.xlane.xlu1 %514 }
 0x376   : > { %947 = vrcp.f32 %v515_v4 }
 0x380   : > { %v948_v8 = vpop.eup %947 }
 0x3bc   : > { %v562_v9 = vpop.f32.mrb[16].mxu1 }
 0x3bd   : > { %v569_v10 = vmul.f32 %v948_v8, %v562_v9  ;;  %v857_v11 = vpop.f32.mrb[17].mxu1 }
 0x3be   : > { %v565_v12 = vpop.f32.mrb[18].mxu1 }
 0x3bf   : > { %v806_v13 = vpack.c.bf16 %v569_v10, %v569_v10  ;;  %v858_v14 = vpop.f32.mrb[19].mxu1 }
 0x3c1   : > { %574 = vrot.lane.b32.xlu1 %v806_v13, %s1016_s27 }
 0x433   : > { %v575_v15 = vpop.permute.xlu1 %574 }
 0x434   : > { %578 = vst.msk [vmem:[#allocation3] sm:$0xf] %vm577_vm6, %v575_v15 }
 0x43b   : > { %v579_v16 = vld [vmem:[#allocation3] sm:$0xf] }
 0x43c   : > { %876 = vmatmul.mubr.bf16.vlgmr.msra.gmra.mrb[4].mxu0 %v579_v16 }
 0x50f   : > { %v685_v17 = vpop.f32.mrb[4].mxu0 }
 0x510   : > { %v686_v18 = vadd.f32 %v791_v5, %v685_v17  ;;  %v877_v19 = vpop.f32.mrb[5].mxu0 }
 0x511   : > { %v688_v20 = vpop.f32.mrb[6].mxu0 }
 0x512   : > { %v691_v21 = vpack.c.bf16 %v686_v18, %v686_v18  ;;  %v878_v22 = vpop.f32.mrb[7].mxu0 }
 0x514   : > { %693 = vst.msk [vmem:[%s188_s7] sm:$0xf] %vm692_vm7, %v691_v21 }
 0x515   : > { %962 = shalt.err (!%p959_p3)
}
 0x516   : > { %s963_s20 = scalar_lea.hbm %s1188_s10, 64  ;;  %s967_s28 = scalar_lea.hbm %s1234_s4, 128 }
 0x517   : > { %p964_p4 = scmp.ne.s32.totalorder %s1188_s10, %s963_s20  ;;  %p968_p9 = scmp.lt.u32.totalorder %s1188_s10, %s1234_s4 }
 0x518   : > { %p969_p10 = scmp.lt.u32.totalorder %s967_s28, %s963_s20  ;;  %p971_p12 = scmp.lt.u32.totalorder %s963_s20, %s1188_s10 }
 0x519   : > { %p965_p7 = pnand %p964_p4, %p1081_p5 }
 0x51a   : > { %p970_p11 = por %p969_p10, %p968_p9 }
 0x51b   : > { %p966_p8 = pneg %p965_p7 }
 0x51c   : > { %p972_p13 = por %p971_p12, %p970_p11 }
 0x51e   : > { %p973_p0 = pnand %p972_p13, %p966_p8 }
 0x520   : > { %976 = shalt.err (!%p973_p0)
}
 0x521   : > { %879 = dma.vmem_to_hbm [thread:$0]  (%p1081_p5), %s1190_s8, 64, %s1188_s10, %s695_s19  }
 0x522 PF: > { %p885_p1 = scmp.ge.s32.totalorder %s1011_s18, 2  ;;  %s720_s5 = sand.u32 1, %s999_s15  }
 0x523   : > { %s721_s6 = scalar_lea.sflag [#allocation5], %s720_s5 }
 0x524   : > { %p882_p2 = pnand %p885_p1, %p1085_p6 }
 0x526   : > { %994 = dma.done.wait (!%p882_p2), %s721_s6, 64  }
 0x527   : > { %996 = vsyncadd (!%p882_p2), %s721_s6, 4294967232  ;;  %p14_p3 = scmp.ge.s32.totalorder %s1068_s21, 4   ;;  %s1237_s15 = smov %s1003_s16 }
 0x528   : > { %s1238_s16 = smov %s1007_s17  ;;  %s1239_s17 = smov %s1079_s24 }
 0x529   : > { %s1240_s18 = smov %s1068_s21  ;;  %16 = sbr.rel (!%p14_p3) target bundleno = 3 (0x3), region = 71 }
 0x530   :  { %726 = vsyncpa [#allocation5], 1 }
 0x531   :  { %728 = vsyncpa [#allocation5 + $0x1], 1 }

</bundles_post_ra>
